<compile_context>
chip_gen: v7x
topology: tpu7x:2x2x1
jax: 0.10.0
libtpu: 0.0.40
codegen_flags: <defaults>
</compile_context>

<pallas_src>
import functools

import jax
import jax.numpy as jnp
from jax import lax
from jax.experimental import pallas as pl
from jax.experimental.pallas import tpu as pltpu

LANES = 128            # lane width (minor dim)
MAX_BLOCK_ROWS = 4096  # sublane rows per grid step per core (~2 MiB f32/input)
NUM_CORES = 2          # leading "parallel" grid axis (both TCs on multi-TC parts)
NEG_FILL = -30.0       # pad logits value: sigmoid/bce contribution ~1e-13/elem


def _row_align(*dtypes):
    """Minimum sublane alignment so the BlockSpec satisfies the dtype min-tile."""
    align = 8
    for dt in dtypes:
        item = jnp.dtype(dt).itemsize
        if item < 4:
            align = max(align, 32 // item)   # bf16 -> 16, int8/bool/fp8 -> 32
    return align


def _dice_bce_kernel(x_ref, t_ref, out_ref, *, rg, n_grp, unroll):
    """Accumulates [sum(p*t), sum(p), sum(t), sum(bce)] as (8,128) partials."""

    @pl.when(pl.program_id(1) == 0)
    def _():
        out_ref[...] = jnp.zeros_like(out_ref)

    def fold(v):  # (rg,128) -> (8,128): whole-vreg regroup + VPU adds only
        return v.reshape(rg // 8, 8, LANES).sum(axis=0)

    def body(j, carry):
        pt, pr, ts, bc = carry
        r0 = pl.multiple_of(j * rg, rg)
        xg = x_ref[pl.ds(r0, rg), :].astype(jnp.float32)
        tg = t_ref[pl.ds(r0, rg), :].astype(jnp.float32)
        # One exp per element, shared by sigmoid and the stable softplus term.
        exp_neg = jnp.exp(-jnp.abs(xg))            # exp(-|x|)
        den = 1.0 + exp_neg
        rcp = pl.reciprocal(den, approx=True)      # EUP slot, off the VALU
        rcp = rcp * (2.0 - den * rcp)              # one Newton step -> ~f32 exact
        prob = jnp.where(xg >= 0, rcp, 1.0 - rcp)  # sigmoid(x)
        # Torch-matching stable BCE-with-logits: max(x,0) - x*t + log1p(exp(-|x|))
        bce = jnp.maximum(xg, 0.0) - xg * tg + jnp.log1p(exp_neg)
        return (pt + fold(prob * tg), pr + fold(prob),
                ts + fold(tg), bc + fold(bce))

    zero = jnp.zeros((8, LANES), jnp.float32)
    pt, pr, ts, bc = lax.fori_loop(0, n_grp, body, (zero, zero, zero, zero),
                                   unroll=unroll)
    out_ref[0] += pt   # intersection
    out_ref[1] += pr   # sum(sigmoid(x))
    out_ref[2] += ts   # sum(targets)
    out_ref[3] += bc   # sum(bce)


def dice_bce_with_logits_loss(inputs, targets, smooth=1.0,
                              block_rows=MAX_BLOCK_ROWS, num_cores=NUM_CORES):
    """Pallas implementation of DiceBCEWithLogitsLoss.forward."""
    assert inputs.shape == targets.shape
    total = int(inputs.size)

    x = inputs.reshape(-1)   # no dtype cast: kernel casts in-register
    t = targets.reshape(-1)

    align = _row_align(x.dtype, t.dtype)
    lane_rem = total % LANES
    rows = total // LANES

    if lane_rem or rows < align:
        # Rare path: numel not lane-divisible (or tiny input).  Pad only up to
        # the next lane row / one aligned block; NEG_FILL logits + 0 targets
        # contribute ~1e-13 per padded element and bce divides by true `total`.
        # TODO(synk): a fully copy-free ragged path needs manual DMA from a 1-D
        # pl.ANY ref; not worth it for <128-element (or tiny-input) pads.
        rows = max(pl.cdiv(total, LANES), align)
        pad = rows * LANES - total
        x = jnp.concatenate([x, jnp.full((pad,), NEG_FILL, dtype=x.dtype)])
        t = jnp.concatenate([t, jnp.zeros((pad,), dtype=t.dtype)])

    x2 = x.reshape(rows, LANES)    # zero-copy on the common path
    t2 = t.reshape(rows, LANES)

    # Aligned-block geometry: br is a multiple of the dtype min-tile alignment.
    n_ablk = rows // align
    ncores = num_cores if n_ablk >= num_cores else 1
    br = min(block_rows, (n_ablk // ncores) * align)
    chunk = br * ncores
    tiles_per_core = rows // chunk          # >= 1 by construction
    main_rows = tiles_per_core * chunk      # rows covered by the kernel grid

    # Fused inner-loop row-group: 32 rows (4 f32 vregs) keeps temporaries in
    # registers; shrink to the min-tile for small blocks.
    rg = 32 if br % 32 == 0 else (16 if br % 16 == 0 else 8)
    n_grp = br // rg
    unroll = n_grp if n_grp <= 4 else 4

    kernel = functools.partial(_dice_bce_kernel, rg=rg, n_grp=n_grp,
                               unroll=unroll)

    partials = pl.pallas_call(
        kernel,
        out_shape=jax.ShapeDtypeStruct((ncores, 4, 8, LANES), jnp.float32),
        grid_spec=pltpu.PrefetchScalarGridSpec(
            num_scalar_prefetch=0,
            grid=(ncores, tiles_per_core),
            in_specs=[
                pl.BlockSpec((br, LANES),
                             lambda c, i: (c * tiles_per_core + i, 0)),
                pl.BlockSpec((br, LANES),
                             lambda c, i: (c * tiles_per_core + i, 0)),
            ],
            out_specs=pl.BlockSpec((None, 4, 8, LANES),
                                   lambda c, i: (c, 0, 0, 0)),
        ),
        compiler_params=pltpu.CompilerParams(
            # TODO(synk): on v7x, pltpu.CORE_PARALLEL on axis 0 would guarantee
            # the 2-TensorCore split; plain "parallel" kept for v5e/v6e safety.
            dimension_semantics=("parallel", "arbitrary"),
            vmem_limit_bytes=32 * 1024 * 1024,
        ),
        cost_estimate=pl.CostEstimate(
            flops=20 * total,
            transcendentals=3 * total,
            bytes_accessed=total * (x2.dtype.itemsize + t2.dtype.itemsize)),
    )(x2, t2)

    sums = jnp.sum(partials, axis=(0, 2, 3))            # (4,) f32

    # Ragged tail (< br*ncores rows): one fused XLA pass over a tiny slice
    # instead of padding / re-streaming the whole input.
    if main_rows < rows:
        xt = x2[main_rows:].astype(jnp.float32)
        tt = t2[main_rows:].astype(jnp.float32)
        prob_t = jax.nn.sigmoid(xt)
        bce_t = (jnp.maximum(xt, 0.0) - xt * tt
                 + jnp.log1p(jnp.exp(-jnp.abs(xt))))
        sums = sums + jnp.stack([jnp.sum(prob_t * tt), jnp.sum(prob_t),
                                 jnp.sum(tt), jnp.sum(bce_t)])

    intersection, prob_sum, tgt_sum, bce_sum = sums[0], sums[1], sums[2], sums[3]
    smooth = jnp.float32(smooth)
    dice_loss = 1.0 - (2.0 * intersection + smooth) / (prob_sum + tgt_sum + smooth)
    bce_mean = bce_sum / jnp.float32(total)
    return bce_mean + dice_loss


def _reference(inputs, targets, smooth=1.0):
    x = inputs.astype(jnp.float32)
    t = targets.astype(jnp.float32)
    prob = jax.nn.sigmoid(x)
    intersection = jnp.sum(prob * t)
    dice = 1.0 - (2.0 * intersection + smooth) / (jnp.sum(prob) + jnp.sum(t) + smooth)
    bce = jnp.mean(jnp.maximum(x, 0.0) - x * t + jnp.log1p(jnp.exp(-jnp.abs(x))))
    return bce + dice


if __name__ == "__main__":
    key = jax.random.PRNGKey(0)
    k1, k2 = jax.random.split(key)

    # Small shapes consistent with a segmentation head: NCHW = (2, 4, 16, 16).
    inputs = jax.random.normal(k1, (2, 4, 16, 16), dtype=jnp.float32)           # logits
    targets = jax.random.bernoulli(k2, 0.5, (2, 4, 16, 16)).astype(jnp.float32)

    loss = dice_bce_with_logits_loss(inputs, targets, smooth=1.0)
    loss = jax.block_until_ready(loss)

    ref = _reference(inputs, targets, smooth=1.0)
    assert jnp.allclose(loss, ref, rtol=1e-4, atol=1e-4), (loss, ref)

    print("KERNEL_OK")
</pallas_src>

<mosaic_0001>
module attributes {stable_mosaic.version = 11 : i64} {
  func.func @_dice_bce_kernel(%arg0: i32, %arg1: i32, %arg2: memref<8x128xf32, #tpu.memory_space<vmem>>, %arg3: memref<8x128xf32, #tpu.memory_space<vmem>>, %arg4: memref<1x4x8x128xf32, #tpu.memory_space<vmem>>) attributes {dimension_semantics = [#tpu.dimension_semantics<parallel>, #tpu.dimension_semantics<arbitrary>], iteration_bounds = array<i64: 2, 1>, scalar_prefetch = 0 : i64, scratch_operands = 0 : i64, tpu.core_type = #tpu.core_type<tc>, window_params = [{transform_indices = @transform_0, window_bounds = array<i64: 8, 128>}, {transform_indices = @transform_1, window_bounds = array<i64: 8, 128>}, {transform_indices = @transform_2, window_bounds = array<i64: 1, 4, 8, 128>}]} {
    %c0_i32 = arith.constant 0 : i32
    %0 = arith.cmpi eq, %arg1, %c0_i32 : i32
    %1 = arith.extui %0 : i1 to i32
    %c0_i32_0 = arith.constant 0 : i32
    %2 = arith.cmpi ne, %1, %c0_i32_0 : i32
    scf.if %2 {
      %cst_42 = arith.constant 0.000000e+00 : f32
      %69 = vector.broadcast %cst_42 : f32 to vector<4x8x128xf32>
      %c0_43 = arith.constant 0 : index
      %c0_44 = arith.constant 0 : index
      %c0_45 = arith.constant 0 : index
      %c0_46 = arith.constant 0 : index
      %70 = vector.load %arg4[%c0_43, %c0_44, %c0_45, %c0_46] : memref<1x4x8x128xf32, #tpu.memory_space<vmem>>, vector<1x4x8x128xf32>
      %71 = vector.shape_cast %70 : vector<1x4x8x128xf32> to vector<4x8x128xf32>
      %72 = vector.shape_cast %69 : vector<4x8x128xf32> to vector<1x4x8x128xf32>
      tpu.vector_store %arg4[%c0_43, %c0_44, %c0_45, %c0_46], %72 {strides = array<i32>} : memref<1x4x8x128xf32, #tpu.memory_space<vmem>>, vector<1x4x8x128xf32>,
    } else {
    }
    %cst = arith.constant 0.000000e+00 : f32
    %3 = vector.broadcast %cst : f32 to vector<8x128xf32>
    %c0_i32_1 = arith.constant 0 : i32
    %c8_i32 = arith.constant 8 : i32
    %4 = arith.muli %c0_i32_1, %c8_i32 : i32
    %5 = tpu.assume_multiple %4, 8 : i32
    %6 = arith.index_cast %5 : i32 to index
    %c0 = arith.constant 0 : index
    %7 = vector.load %arg2[%6, %c0] : memref<8x128xf32, #tpu.memory_space<vmem>>, vector<8x128xf32>
    %8 = arith.index_cast %5 : i32 to index
    %c0_2 = arith.constant 0 : index
    %9 = vector.load %arg3[%8, %c0_2] : memref<8x128xf32, #tpu.memory_space<vmem>>, vector<8x128xf32>
    %10 = math.absf %7 : vector<8x128xf32>
    %cst_3 = arith.constant 0.000000e+00 : f32
    %11 = vector.broadcast %cst_3 : f32 to vector<8x128xf32>
    %12 = arith.subf %11, %10 : vector<8x128xf32>
    %13 = math.exp %12 : vector<8x128xf32>
    %cst_4 = arith.constant 1.000000e+00 : f32
    %14 = vector.broadcast %cst_4 : f32 to vector<8x128xf32>
    %15 = arith.addf %14, %13 : vector<8x128xf32>
    %16 = tpu.reciprocal %15 {approx = true} : vector<8x128xf32> -> vector<8x128xf32>
    %17 = arith.mulf %15, %16 : vector<8x128xf32>
    %cst_5 = arith.constant 2.000000e+00 : f32
    %18 = vector.broadcast %cst_5 : f32 to vector<8x128xf32>
    %19 = arith.subf %18, %17 : vector<8x128xf32>
    %20 = arith.mulf %16, %19 : vector<8x128xf32>
    %cst_6 = arith.constant 0.000000e+00 : f32
    %21 = vector.broadcast %cst_6 : f32 to vector<8x128xf32>
    %22 = arith.cmpf oge, %7, %21 : vector<8x128xf32>
    %cst_7 = arith.constant 1.000000e+00 : f32
    %23 = vector.broadcast %cst_7 : f32 to vector<8x128xf32>
    %24 = arith.subf %23, %20 : vector<8x128xf32>
    %25 = arith.select %22, %20, %24 : vector<8x128xi1>, vector<8x128xf32>
    %cst_8 = arith.constant 0.000000e+00 : f32
    %26 = vector.broadcast %cst_8 : f32 to vector<8x128xf32>
    %27 = arith.maximumf %7, %26 : vector<8x128xf32>
    %28 = arith.mulf %7, %9 : vector<8x128xf32>
    %29 = arith.subf %27, %28 : vector<8x128xf32>
    %30 = math.log1p %13 : vector<8x128xf32>
    %31 = arith.addf %29, %30 : vector<8x128xf32>
    %32 = arith.mulf %25, %9 : vector<8x128xf32>
    %33 = vector.shape_cast %32 : vector<8x128xf32> to vector<1x8x128xf32>
    %cst_9 = arith.constant dense<0.000000e+00> : vector<8x128xf32>
    %34 = vector.multi_reduction <add>, %33, %cst_9 [0] : vector<1x8x128xf32> to vector<8x128xf32>
    %35 = arith.addf %3, %34 : vector<8x128xf32>
    %36 = vector.shape_cast %25 : vector<8x128xf32> to vector<1x8x128xf32>
    %cst_10 = arith.constant dense<0.000000e+00> : vector<8x128xf32>
    %37 = vector.multi_reduction <add>, %36, %cst_10 [0] : vector<1x8x128xf32> to vector<8x128xf32>
    %38 = arith.addf %3, %37 : vector<8x128xf32>
    %39 = vector.shape_cast %9 : vector<8x128xf32> to vector<1x8x128xf32>
    %cst_11 = arith.constant dense<0.000000e+00> : vector<8x128xf32>
    %40 = vector.multi_reduction <add>, %39, %cst_11 [0] : vector<1x8x128xf32> to vector<8x128xf32>
    %41 = arith.addf %3, %40 : vector<8x128xf32>
    %42 = vector.shape_cast %31 : vector<8x128xf32> to vector<1x8x128xf32>
    %cst_12 = arith.constant dense<0.000000e+00> : vector<8x128xf32>
    %43 = vector.multi_reduction <add>, %42, %cst_12 [0] : vector<1x8x128xf32> to vector<8x128xf32>
    %44 = arith.addf %3, %43 : vector<8x128xf32>
    %c1_i32 = arith.constant 1 : i32
    %c0_13 = arith.constant 0 : index
    %c0_14 = arith.constant 0 : index
    %c0_15 = arith.constant 0 : index
    %c0_16 = arith.constant 0 : index
    %45 = vector.load %arg4[%c0_13, %c0_14, %c0_15, %c0_16] : memref<1x4x8x128xf32, #tpu.memory_space<vmem>>, vector<1x1x8x128xf32>
    %46 = vector.shape_cast %45 : vector<1x1x8x128xf32> to vector<8x128xf32>
    %47 = arith.addf %46, %35 : vector<8x128xf32>
    %c0_17 = arith.constant 0 : index
    %c0_18 = arith.constant 0 : index
    %c0_19 = arith.constant 0 : index
    %c0_20 = arith.constant 0 : index
    %48 = vector.load %arg4[%c0_17, %c0_18, %c0_19, %c0_20] : memref<1x4x8x128xf32, #tpu.memory_space<vmem>>, vector<1x1x8x128xf32>
    %49 = vector.shape_cast %48 : vector<1x1x8x128xf32> to vector<8x128xf32>
    %50 = vector.shape_cast %47 : vector<8x128xf32> to vector<1x1x8x128xf32>
    tpu.vector_store %arg4[%c0_17, %c0_18, %c0_19, %c0_20], %50 {strides = array<i32>} : memref<1x4x8x128xf32, #tpu.memory_space<vmem>>, vector<1x1x8x128xf32>,
    %c0_21 = arith.constant 0 : index
    %c1 = arith.constant 1 : index
    %c0_22 = arith.constant 0 : index
    %c0_23 = arith.constant 0 : index
    %51 = vector.load %arg4[%c0_21, %c1, %c0_22, %c0_23] : memref<1x4x8x128xf32, #tpu.memory_space<vmem>>, vector<1x1x8x128xf32>
    %52 = vector.shape_cast %51 : vector<1x1x8x128xf32> to vector<8x128xf32>
    %53 = arith.addf %52, %38 : vector<8x128xf32>
    %c0_24 = arith.constant 0 : index
    %c1_25 = arith.constant 1 : index
    %c0_26 = arith.constant 0 : index
    %c0_27 = arith.constant 0 : index
    %54 = vector.load %arg4[%c0_24, %c1_25, %c0_26, %c0_27] : memref<1x4x8x128xf32, #tpu.memory_space<vmem>>, vector<1x1x8x128xf32>
    %55 = vector.shape_cast %54 : vector<1x1x8x128xf32> to vector<8x128xf32>
    %56 = vector.shape_cast %53 : vector<8x128xf32> to vector<1x1x8x128xf32>
    tpu.vector_store %arg4[%c0_24, %c1_25, %c0_26, %c0_27], %56 {strides = array<i32>} : memref<1x4x8x128xf32, #tpu.memory_space<vmem>>, vector<1x1x8x128xf32>,
    %c0_28 = arith.constant 0 : index
    %c2 = arith.constant 2 : index
    %c0_29 = arith.constant 0 : index
    %c0_30 = arith.constant 0 : index
    %57 = vector.load %arg4[%c0_28, %c2, %c0_29, %c0_30] : memref<1x4x8x128xf32, #tpu.memory_space<vmem>>, vector<1x1x8x128xf32>
    %58 = vector.shape_cast %57 : vector<1x1x8x128xf32> to vector<8x128xf32>
    %59 = arith.addf %58, %41 : vector<8x128xf32>
    %c0_31 = arith.constant 0 : index
    %c2_32 = arith.constant 2 : index
    %c0_33 = arith.constant 0 : index
    %c0_34 = arith.constant 0 : index
    %60 = vector.load %arg4[%c0_31, %c2_32, %c0_33, %c0_34] : memref<1x4x8x128xf32, #tpu.memory_space<vmem>>, vector<1x1x8x128xf32>
    %61 = vector.shape_cast %60 : vector<1x1x8x128xf32> to vector<8x128xf32>
    %62 = vector.shape_cast %59 : vector<8x128xf32> to vector<1x1x8x128xf32>
    tpu.vector_store %arg4[%c0_31, %c2_32, %c0_33, %c0_34], %62 {strides = array<i32>} : memref<1x4x8x128xf32, #tpu.memory_space<vmem>>, vector<1x1x8x128xf32>,
    %c0_35 = arith.constant 0 : index
    %c3 = arith.constant 3 : index
    %c0_36 = arith.constant 0 : index
    %c0_37 = arith.constant 0 : index
    %63 = vector.load %arg4[%c0_35, %c3, %c0_36, %c0_37] : memref<1x4x8x128xf32, #tpu.memory_space<vmem>>, vector<1x1x8x128xf32>
    %64 = vector.shape_cast %63 : vector<1x1x8x128xf32> to vector<8x128xf32>
    %65 = arith.addf %64, %44 : vector<8x128xf32>
    %c0_38 = arith.constant 0 : index
    %c3_39 = arith.constant 3 : index
    %c0_40 = arith.constant 0 : index
    %c0_41 = arith.constant 0 : index
    %66 = vector.load %arg4[%c0_38, %c3_39, %c0_40, %c0_41] : memref<1x4x8x128xf32, #tpu.memory_space<vmem>>, vector<1x1x8x128xf32>
    %67 = vector.shape_cast %66 : vector<1x1x8x128xf32> to vector<8x128xf32>
    %68 = vector.shape_cast %65 : vector<8x128xf32> to vector<1x1x8x128xf32>
    tpu.vector_store %arg4[%c0_38, %c3_39, %c0_40, %c0_41], %68 {strides = array<i32>} : memref<1x4x8x128xf32, #tpu.memory_space<vmem>>, vector<1x1x8x128xf32>,
    return
  }
  func.func @transform_0(%arg0: i32, %arg1: i32) -> (i32, i32) {
    %c1_i32 = arith.constant 1 : i32
    %0 = arith.muli %arg0, %c1_i32 : i32
    %1 = arith.addi %0, %arg1 : i32
    %c0_i32 = arith.constant 0 : i32
    %c0_i32_0 = arith.constant 0 : i32
    return %1, %c0_i32 : i32, i32
  }
  func.func @transform_1(%arg0: i32, %arg1: i32) -> (i32, i32) {
    %c1_i32 = arith.constant 1 : i32
    %0 = arith.muli %arg0, %c1_i32 : i32
    %1 = arith.addi %0, %arg1 : i32
    %c0_i32 = arith.constant 0 : i32
    %c0_i32_0 = arith.constant 0 : i32
    return %1, %c0_i32 : i32, i32
  }
  func.func @transform_2(%arg0: i32, %arg1: i32) -> (i32, i32, i32, i32) {
    %c0_i32 = arith.constant 0 : i32
    %c0_i32_0 = arith.constant 0 : i32
    %c0_i32_1 = arith.constant 0 : i32
    %c0_i32_2 = arith.constant 0 : i32
    return %arg0, %c0_i32, %c0_i32_0, %c0_i32_1 : i32, i32, i32, i32
  }
}

</mosaic_0001>

<bundles_post_ra>
// kernel: tpu_custom_call.1
= control target key start
LH: loop header
LB: loop body
LE: loop exit
PB: predicated region body
PF: predicated region fallthrough
CT: control target
= control target key end

     0   :  { %7 = vsyncpa [#allocation3], 0  ;;  %s893_s0 = inlined_call_operand.hbm [shape: f32[16,128], index: 0, kind: input, shape index: {}]   ;;  %s894_s1 = inlined_call_operand.hbm [shape: f32[16,128], index: 1, kind: input, shape index: {}]   ;;  %s895_s2 = inlined_call_operand.hbm [shape: f32[2,4,8,128], index: 2, kind: output, shape index: {}]  }
   0x1   :  { %9 = vsyncpa [#allocation3 + $0x1], 0 }
   0x2   :  { %10 = vsyncpa [#allocation6], 0 }
   0x3   :  { %12 = vsyncpa [#allocation6 + $0x1], 0 }
   0x4   :  { %13 = vsyncpa [#allocation4], 0 }
   0x5   :  { %15 = vsyncpa [#allocation4 + $0x1], 0  ;;  %s663_s9 = smov 0   ;;  %s665_s10 = smov 0  }
   0x6   :  { %s667_s11 = smov 0   ;;  %s669_s12 = smov 0  }
   0x7   :  { %s671_s13 = smov 0   ;;  %s673_s14 = smov 0  }
   0x8 LB: > { %s395_s15 = sadd.s32 4294967295, %s641_s14   ;;  %s396_s16 = sadd.s32 4294967294, %s641_s14   ;;  %s641_s14 = sphi %s673_s14, %s21_s14   ;;  %s637_s13 = sphi %s671_s13, %s915_s13   ;;  %s633_s12 = sphi %s669_s12, %s914_s12   ;;  %s629_s11 = sphi %s667_s11, %s913_s11   ;;  %s625_s10 = sphi %s665_s10, %s912_s10   ;;  %s621_s9 = sphi %s663_s9, %s911_s9  }
   0x9   : > { %s33_s17 = sadd.s32 1, %s637_s13  ;;  %s42_s18 = sadd.s32 1, %s629_s11 }
   0xa   : > { %p35_p0 = scmp.ge.s32.totalorder %s33_s17, 2  ;;  %p49_p1 = scmp.ne.s32.totalorder %s629_s11, %s625_s10 }
   0xb   : > { %p50_p2 = scmp.eq.s32.totalorder %s641_s14, 0  ;;  %p55_p3 = scmp.ne.s32.totalorder %s625_s10, %s621_s9 }
   0xc   : > { %s917_s17 = smov (%p35_p0, %s33_s17), 0  ;;  %p56_p5 = scmp.eq.s32.totalorder %s395_s15, 0 }
   0xd   : > { %p704_p4 = por %p50_p2, %p49_p1  ;;  %s39_s20 = ssub.s32 %s637_s13, %s917_s17 }
   0xe   : > { %p107_p6 = scmp.eq.s32.totalorder %s395_s15, 1  ;;  %p40_p7 = scmp.eq.s32.totalorder %s39_s20, 0 }
   0xf   : > { %p710_p8 = por %p56_p5, %p55_p3  ;;  %p113_p10 = scmp.eq.s32.totalorder %s396_s16, 1 }
  0x10   : > { %p714_p9 = por %p107_p6, %p49_p1  ;;  %p436_p13 = scmp.lt.s32.totalorder %s641_s14, 2 }
  0x11   : > { %s899_s21 = scalar_select %p710_p8, 1, 0 }
  0x12   : > { %s900_s22 = scalar_select %p714_p9, 1, 0 }
  0x13   : > { %s719_s23 = scalar_select %p40_p7, %s629_s11, %s42_s18  }
  0x14   : > { %p721_p11 = por %p113_p10, %p55_p3  ;;  %s728_s25 = sand.u32 1, %s629_s11  }
  0x15   : > { %s399_s26 = sshll.u32 %s728_s25, 3  ;;  %s400_s27 = sshll.u32 %s637_s13, 7 }
  0x16   : > { %s901_s24 = scalar_select %p721_p11, 1, 0 }
  0x17   : > { %s737_s30 = scalar_lea.hbm %s893_s0, %s400_s27  ;;  %s137_s3 = scalar_lea.vmem [#allocation2], %s399_s26 }
  0x18   : > { %s145_s4 = sshll.u32 %s137_s3, 4  ;;  %p745_p0 = pnand %p436_p13, %p704_p4  ;;  %s741_s4 = int_to_ptr.vmem [resolvable:$true] %s145_s4 }
  0x19   : > { %s134_s6 = scalar_lea.sflag [#allocation3], %s728_s25  ;;  %s495_s7 = scalar_lea.hbm %s737_s30, 128 }
  0x1a   : > { %p496_p3 = scmp.ne.s32.totalorder %s737_s30, %s495_s7  ;;  %p497_p5 = pneg %p745_p0 }
  0x1b   : > { %s500_s16 = scalar_lea.hbm %s893_s0, 256  ;;  %p501_p4 = scmp.lt.u32.totalorder %s737_s30, %s893_s0 }
  0x1c   : > { %p498_p6 = pnand %p497_p5, %p496_p3  ;;  %p502_p10 = scmp.lt.u32.totalorder %s500_s16, %s495_s7 }
  0x1d   : > { %p504_p12 = scmp.lt.u32.totalorder %s495_s7, %s737_s30 }
  0x1e   : > { %p499_p7 = pneg %p498_p6  ;;  %p503_p13 = por %p502_p10, %p501_p4 }
  0x20   : > { %p505_p1 = por %p504_p12, %p503_p13 }
  0x22   : > { %p506_p2 = pnand %p505_p1, %p499_p7 }
  0x24   : > { %509 = shalt.err (!%p506_p2)
}
  0x25   : > { %s510_s20 = scalar_lea.vmem %s741_s4, 128  ;;  %s643_s28 = smov [#allocation2]  }
  0x26   : > { %p511_p3 = scmp.ne.s32.totalorder %s741_s4, %s510_s20  ;;  %s515_s29 = sshll.u32 %s643_s28, 4  ;;  %s516_s29 = int_to_ptr.vmem [resolvable:$false] %s515_s29 }
  0x27   : > { %s517_s3 = scalar_lea.vmem %s516_s29, 256  ;;  %p518_p9 = scmp.lt.s32.totalorder %s741_s4, %s516_s29 }
  0x28   : > { %p513_p6 = pnand %p511_p3, %p497_p5  ;;  %p519_p4 = scmp.lt.s32.totalorder %s517_s3, %s510_s20 }
  0x2a   : > { %p514_p11 = pneg %p513_p6  ;;  %p520_p10 = por %p519_p4, %p518_p9 }
  0x2c   : > { %p521_p12 = pnand %p520_p10, %p514_p11 }
  0x2e   : > { %524 = shalt.err (!%p521_p12)
}
  0x2f   : > { %428 = dma.hbm_to_vmem [thread:$0]  (!%p745_p0), %s737_s30, 128, %s741_s4, %s134_s6  }
  0x30   : > { %p903_p1 = scmp.lt.s32.totalorder %s641_s14, 3  ;;  %p904_p2 = scmp.ge.s32.totalorder %s641_s14, 1 }
  0x31   : > { %s790_s16 = scalar_lea.hbm %s894_s1, %s400_s27  ;;  %s156_s18 = scalar_lea.vmem [#allocation5], %s399_s26 }
  0x32   : > { %p781_p7 = pnand %p904_p2, %p903_p1  ;;  %s164_s19 = sshll.u32 %s156_s18, 4  ;;  %s165_s19 = int_to_ptr.vmem [resolvable:$true] %s164_s19 }
  0x33   : > { %s153_s30 = scalar_lea.sflag [#allocation6], %s728_s25  ;;  %s525_s4 = scalar_lea.hbm %s790_s16, 128 }
  0x34   : > { %s905_s7 = scalar_select %p781_p7, 1, 0 }
  0x35   : > { %p526_p9 = scmp.ne.s32.totalorder %s790_s16, %s525_s4  ;;  %s530_s27 = scalar_lea.hbm %s894_s1, 256 }
  0x36   : > { %p531_p3 = scmp.lt.u32.totalorder %s790_s16, %s894_s1  ;;  %p532_p6 = scmp.lt.u32.totalorder %s530_s27, %s525_s4 }
  0x37   : > { %p528_p11 = pnand %p526_p9, %p497_p5  ;;  %p534_p10 = scmp.lt.u32.totalorder %s525_s4, %s790_s16 }
  0x38   : > { %p533_p4 = por %p532_p6, %p531_p3 }
  0x39   : > { %p529_p13 = pneg %p528_p11 }
  0x3a   : > { %p535_p12 = por %p534_p10, %p533_p4 }
  0x3c   : > { %p536_p1 = pnand %p535_p12, %p529_p13 }
  0x3e   : > { %539 = shalt.err (!%p536_p1)
}
  0x3f   : > { %s540_s25 = scalar_lea.vmem %s165_s19, 128  ;;  %s644_s26 = smov [#allocation5]  }
  0x40   : > { %p541_p2 = scmp.ne.s32.totalorder %s165_s19, %s540_s25  ;;  %s545_s3 = sshll.u32 %s644_s26, 4  ;;  %s546_s3 = int_to_ptr.vmem [resolvable:$false] %s545_s3 }
  0x41   : > { %s547_s8 = scalar_lea.vmem %s546_s3, 256  ;;  %p548_p8 = scmp.lt.s32.totalorder %s165_s19, %s546_s3 }
  0x42   : > { %p543_p9 = pnand %p541_p2, %p497_p5  ;;  %p549_p7 = scmp.lt.s32.totalorder %s547_s8, %s540_s25 }
  0x44   : > { %p544_p11 = pneg %p543_p9  ;;  %p550_p3 = por %p549_p7, %p548_p8 }
  0x46   : > { %p551_p6 = pnand %p550_p3, %p544_p11 }
  0x48   : > { %554 = shalt.err (!%p551_p6)
}
  0x49   : > { %431 = dma.hbm_to_vmem [thread:$0]  (!%p745_p0), %s790_s16, 128, %s165_s19, %s153_s30  }
  0x4a   : > { %p906_p13 = scmp.ne.s32.totalorder %s905_s7, 0 }
  0x4b   : > { %s817_s15 = sand.u32 (!%p906_p13), 1, %s625_s10   ;;  %p907_p5 = scmp.ne.s32.totalorder (!%p906_p13), %s899_s21, 0 }
  0x4c   : > { %173 = sbr.rel (%p906_p13) target bundleno = 143 (0x8f), region = 28  ;;  %s404_s18 = sshll.u32 (!%p906_p13), %s817_s15, 3 }
  0x4d   : > { %s176_s4 = scalar_lea.sflag (!%p906_p13), [#allocation3], %s817_s15  ;;  %s179_s6 = scalar_lea.vmem (!%p906_p13), [#allocation2], %s404_s18 }
  0x53   : > { %608 = dma.done.wait (%p907_p5), %s176_s4, 128  }
  0x54   : > { %610 = vsyncadd (%p907_p5), %s176_s4, 4294967168  ;;  %s185_s5 = scalar_lea.sflag [#allocation6], %s817_s15  ;;  %s188_s16 = scalar_lea.vmem [#allocation5], %s404_s18 }
  0x55   : > { %612 = dma.done.wait (%p907_p5), %s185_s5, 128  }
  0x56   : > { %614 = vsyncadd (%p907_p5), %s185_s5, 4294967168  ;;  %s406_s7 = sshll.u32 %s817_s15, 5  ;;  %v224_v0 = vld [vmem:[%s179_s6] sm:$0xff]  ;;  %v225_v1 = vld [vmem:[%s188_s16] sm:$0xff]  ;;  %s418_s21 = sshll.u32 %s633_s12, 9 }
  0x57   : > { %v226_v2 = vand.u32 2147483647, %v224_v0  ;;  %s831_s19 = scalar_lea.vmem [#allocation7], %s406_s7  ;;  %v238_v9 = vmax.f32 %v224_v0, 0.0  ;;  %v239_v10 = vmul.f32 %v225_v1, %v224_v0  ;;  %vm235_vm1 = vcmp.ge.f32.partialorder %v224_v0, 0.0  ;;  %s840_s28 = scalar_lea.hbm %s895_s2, %s418_s21 }
  0x58   : > { %410 = vst [vmem:[%s831_s19 + $0x10] sm:$0xff] %v225_v1  ;;  %s289_s30 = sshll.u32 %s831_s19, 4  ;;  %s276_s29 = scalar_lea.sflag [#allocation4], %s817_s15  ;;  %s842_s30 = int_to_ptr.vmem [resolvable:$true] %s289_s30 }
  0x59   : > { %v227_v3 = vsub.f32 0.0, %v226_v2  ;;  %v240_v16 = vsub.f32 %v238_v9, %v239_v10  ;;  %s555_s25 = scalar_lea.vmem %s842_s30, 512  ;;  %p908_p0 = scmp.ne.s32.totalorder %s900_s22, 0 }
  0x5a   : > { %p556_p8 = scmp.ne.s32.totalorder %s842_s30, %s555_s25  ;;  %s645_s12 = smov [#allocation7]  }
  0x5b   : > { %v228_v4 = vmul.f32 1.442695, %v227_v3  ;;  %s559_s26 = sshll.u32 %s645_s12, 4  ;;  %s560_s26 = int_to_ptr.vmem [resolvable:$false] %s559_s26 }
  0x5c   : > { %p557_p7 = pnand %p556_p8, %p908_p0  ;;  %s561_s3 = scalar_lea.vmem %s560_s26, 1024 }
  0x5d   : > { %489 = vpow2.f32 %v228_v4  ;;  %p562_p10 = scmp.lt.s32.totalorder %s842_s30, %s560_s26  ;;  %p563_p12 = scmp.lt.s32.totalorder %s561_s3, %s555_s25 }
  0x5e   : > { %p558_p4 = pneg %p557_p7 }
  0x5f   : > { %p564_p1 = por %p563_p12, %p562_p10 }
  0x61   : > { %p565_p2 = pnand %p564_p1, %p558_p4 }
  0x67   : > { %v490_v5 = vpop.eup %489 }
  0x68   : > { %v230_v6 = vadd.f32 1.0, %v490_v5  ;;  %v244_v7 = vmul.f32 -0.5, %v490_v5  ;;  %v247_v11 = vand.u32 2147483647, %v490_v5 }
  0x6a   : > { %491 = vrcp.f32 %v230_v6  ;;  %v245_v8 = vadd.f32 1.0, %v244_v7  ;;  %vm248_vm0 = vcmp.lt.f32.partialorder %v247_v11, 0.0004427343 }
  0x6b   : > { %493 = vlog2.f32 %v230_v6 }
  0x6c   : > { %v246_v13 = vmul.f32 %v490_v5, %v245_v8 }
  0x74   : > { %v492_v12 = vpop.eup %491 }
  0x75   : > { %v494_v14 = vpop.eup %493  ;;  %v232_v15 = vmul.f32 %v492_v12, %v230_v6 }
  0x76   : > { %v243_v17 = vmul.f32 0.6931472, %v494_v14 }
  0x77   : > { %v233_v18 = vsub.f32 2.0, %v232_v15 }
  0x78   : > { %v249_v19 = vsel %vm248_vm0, %v246_v13, %v243_v17 }
  0x79   : > { %v234_v20 = vmul.f32 %v492_v12, %v233_v18  ;;  %v250_v21 = vadd.f32 %v249_v19, %v240_v16 }
  0x7b   : > { %v236_v22 = vsub.f32 1.0, %v234_v20  ;;  %412 = vst [vmem:[%s831_s19 + $0x18] sm:$0xff] %v250_v21 }
  0x7d   : > { %v237_v23 = vsel %vm235_vm1, %v234_v20, %v236_v22 }
  0x7e   : > { %v251_v24 = vmul.f32 %v237_v23, %v225_v1  ;;  %408 = vst [vmem:[%s831_s19 + $0x8] sm:$0xff] %v237_v23 }
  0x80   : > { %262 = vst [vmem:[%s831_s19] sm:$0xff] %v251_v24 }
  0x81   : > { %568 = shalt.err (!%p565_p2)
}
  0x82   : > { %s569_s8 = scalar_lea.hbm %s840_s28, 512  ;;  %s573_s6 = scalar_lea.hbm %s895_s2, 1024 }
  0x83   : > { %p570_p9 = scmp.ne.s32.totalorder %s840_s28, %s569_s8  ;;  %p574_p6 = scmp.lt.u32.totalorder %s840_s28, %s895_s2 }
  0x84   : > { %p575_p13 = scmp.lt.u32.totalorder %s573_s6, %s569_s8  ;;  %p577_p8 = scmp.lt.u32.totalorder %s569_s8, %s840_s28 }
  0x85   : > { %p571_p11 = pnand %p570_p9, %p908_p0 }
  0x86   : > { %p576_p5 = por %p575_p13, %p574_p6 }
  0x87   : > { %p572_p3 = pneg %p571_p11 }
  0x88   : > { %p578_p7 = por %p577_p8, %p576_p5 }
  0x8a   : > { %p579_p4 = pnand %p578_p7, %p572_p3 }
  0x8c   : > { %582 = shalt.err (!%p579_p4)
}
  0x8d   : > { %s646_s7 = smov 128   ;;  %s647_s19 = smov 8  }
  0x8e   : > { %423 = dma.vmem_to_hbm [thread:$0]  (%p908_p0), %s842_s30, 512, %s840_s28, %s276_s29, %s646_s7, %s646_s7, %s647_s19  }
  0x8f PF: > { %s304_s21 = sand.u32 1, %s621_s9   ;;  %p909_p10 = scmp.ne.s32.totalorder %s901_s24, 0 }
  0x90   : > { %p910_p12 = scmp.ge.s32.totalorder %s641_s14, 2  ;;  %s305_s20 = scalar_lea.sflag [#allocation4], %s304_s21 }
  0x92   : > { %p433_p1 = pnand %p910_p12, %p909_p10 }
  0x94   : > { %616 = dma.done.wait (!%p433_p1), %s305_s20, 512  }
  0x95   : > { %618 = vsyncadd (!%p433_p1), %s305_s20, 4294966784  ;;  %s21_s14 = sadd.s32 1, %s641_s14   ;;  %s911_s9 = smov %s625_s10 }
  0x96   : > { %p18_p2 = scmp.ge.s32.totalorder %s21_s14, 4   ;;  %s912_s10 = smov %s629_s11 }
  0x97   : > { %s913_s11 = smov %s719_s23  ;;  %s914_s12 = smov %s637_s13 }
  0x98   : > { %s915_s13 = smov %s917_s17  ;;  %20 = sbr.rel (!%p18_p2) target bundleno = 8 (0x8), region = 93 }
  0x9f   :  { %310 = vsyncpa [#allocation3], 1 }
  0xa0   :  { %312 = vsyncpa [#allocation3 + $0x1], 1 }
  0xa1   :  { %313 = vsyncpa [#allocation6], 1 }
  0xa2   :  { %315 = vsyncpa [#allocation6 + $0x1], 1 }
  0xa3   :  { %316 = vsyncpa [#allocation4], 1 }
  0xa4   :  { %318 = vsyncpa [#allocation4 + $0x1], 1 }

</bundles_post_ra>
